<compile_context>
chip_gen: v6e
topology: v6e:2x2x1
jax: 0.10.0
libtpu: 0.0.40
codegen_flags: <defaults>
</compile_context>

<pallas_src>
import jax
import jax.numpy as jnp
from jax.experimental import pallas as pl
from jax.experimental.pallas import tpu as pltpu

_LANES = 128
_BLOCK_BYTE_BUDGET = 4 << 20      # ~4 MiB per block (per perf review)
_VMEM_LIMIT_BYTES = 32 << 20      # grants 2x(in+out) double-buffered blocks


def _copy_kernel(x_ref, o_ref):
    o_ref[...] = x_ref[...]


def _choose_tile_rows(rows: int, itemsize: int) -> int:
    """Pick an (8,128)-aligned row tile under the byte budget.

    Prefers an exact divisor of `rows` (no overlapping clamped last block) and
    splits single-block cases in two so v7x's second TensorCore isn't idle.
    """
    if rows % 8 != 0:
        # Full-extent block is always legal regardless of (8,128) alignment.
        return rows

    budget_rows = max(8, (_BLOCK_BYTE_BUDGET // (_LANES * itemsize)) // 8 * 8)

    if rows <= budget_rows:
        tile = rows
    else:
        # Largest multiple of 8 <= budget_rows that divides rows evenly.
        tile = 0
        t = budget_rows
        while t >= 8:
            if rows % t == 0:
                tile = t
                break
            t -= 8
        if tile == 0:
            tile = budget_rows  # fallback: cdiv grid, clamped last block

    # v7x megacore: a grid of (1,) cannot be split across the 2 TensorCores;
    # halve the tile when alignment allows so both cores stream half each.
    if tile == rows and rows >= 16 and (rows // 2) % 8 == 0:
        tile = rows // 2

    return tile


@jax.jit
def identity_copy_pallas(x):
    """Retained Pallas identity copy (benchmark/ABI path only)."""
    n = x.size
    if n == 0 or n % _LANES != 0:
        # Not lane-alignable without padding; identity needs no kernel anyway.
        return x

    rows = n // _LANES
    x2 = x.reshape(rows, _LANES)  # lane-dense 2-D view (unmasked vst)

    tile_rows = _choose_tile_rows(rows, x.dtype.itemsize)
    grid = (pl.cdiv(rows, tile_rows),)

    out2 = pl.pallas_call(
        _copy_kernel,
        out_shape=jax.ShapeDtypeStruct((rows, _LANES), x.dtype),
        grid=grid,
        in_specs=[pl.BlockSpec((tile_rows, _LANES), lambda i: (i, 0))],
        out_specs=pl.BlockSpec((tile_rows, _LANES), lambda i: (i, 0)),
        compiler_params=pltpu.CompilerParams(
            dimension_semantics=("parallel",),
            vmem_limit_bytes=_VMEM_LIMIT_BYTES),
        cost_estimate=pl.CostEstimate(
            flops=0,
            transcendentals=0,
            bytes_accessed=2 * x.size * x.dtype.itemsize),
    )(x2)
    return out2.reshape(x.shape)


def augment_model_none(idx, x):
    """Pallas equivalent of AugmentModelNONE.forward(idx, x) == x.

    `idx` is ignored, matching the PyTorch module. The optimal 'kernel' for an
    identity is no kernel: return x and let XLA alias/forward the buffer.
    """
    del idx
    return x


if __name__ == "__main__":
    key = jax.random.PRNGKey(0)
    k_idx, k_x = jax.random.split(key)

    # Small NCHW input consistent with a typical conv-model augmentation hook.
    x = jax.random.normal(k_x, (2, 4, 16, 16), dtype=jnp.float32)
    idx = jax.random.randint(k_idx, (2,), 0, 10)  # unused by the forward pass

    # Primary (kernel-free) path — the module's actual forward semantics.
    out = augment_model_none(idx, x)
    out = jax.block_until_ready(out)
    assert out.shape == x.shape and out.dtype == x.dtype
    assert bool(jnp.all(out == x))

    # Retained optimized Pallas kernel path (benchmark/ABI contract).
    out_k = identity_copy_pallas(x)
    out_k = jax.block_until_ready(out_k)
    assert out_k.shape == x.shape and out_k.dtype == x.dtype
    assert bool(jnp.all(out_k == x))

    print("KERNEL_OK")
</pallas_src>

<mosaic_0001>
module attributes {stable_mosaic.version = 11 : i64} {
  func.func @_copy_kernel(%arg0: i32, %arg1: memref<8x128xf32, #tpu.memory_space<vmem>>, %arg2: memref<8x128xf32, #tpu.memory_space<vmem>>) attributes {dimension_semantics = [#tpu.dimension_semantics<parallel>], iteration_bounds = array<i64: 2>, scalar_prefetch = 0 : i64, scratch_operands = 0 : i64, tpu.core_type = #tpu.core_type<tc>, window_params = [{transform_indices = @transform_0, window_bounds = array<i64: 8, 128>}, {transform_indices = @transform_1, window_bounds = array<i64: 8, 128>}]} {
    %c0 = arith.constant 0 : index
    %c0_0 = arith.constant 0 : index
    %0 = vector.load %arg1[%c0, %c0_0] : memref<8x128xf32, #tpu.memory_space<vmem>>, vector<8x128xf32>
    %c0_1 = arith.constant 0 : index
    %c0_2 = arith.constant 0 : index
    %1 = vector.load %arg2[%c0_1, %c0_2] : memref<8x128xf32, #tpu.memory_space<vmem>>, vector<8x128xf32>
    tpu.vector_store %arg2[%c0_1, %c0_2], %0 {strides = array<i32>} : memref<8x128xf32, #tpu.memory_space<vmem>>, vector<8x128xf32>,
    return
  }
  func.func @transform_0(%arg0: i32) -> (i32, i32) {
    %c0_i32 = arith.constant 0 : i32
    %c0_i32_0 = arith.constant 0 : i32
    return %arg0, %c0_i32 : i32, i32
  }
  func.func @transform_1(%arg0: i32) -> (i32, i32) {
    %c0_i32 = arith.constant 0 : i32
    %c0_i32_0 = arith.constant 0 : i32
    return %arg0, %c0_i32 : i32, i32
  }
}

</mosaic_0001>

<bundles_post_ra>
// kernel: identity_copy_pallas.1
= control target key start
LH: loop header
LB: loop body
LE: loop exit
PB: predicated region body
PF: predicated region fallthrough
CT: control target
= control target key end

     0   :  { %s188_s6 = smov 0   ;;  %s208_s0 = inlined_call_operand.vmem [shape: f32[16,128], index: 0, kind: input, shape index: {}]   ;;  %s209_s1 = inlined_call_operand.vmem [shape: f32[16,128], index: 1, kind: output, shape index: {}]  }
   0x1 LB: > { %s167_s7 = sadd.s32 4294967295, %s190_s6   ;;  %p171_p0 = scmp.ge.s32.totalorder %s190_s6, 1  ;;  %s190_s6 = sphi %s188_s6, %s11_s6  }
   0x2   : > { %p86_p1 = scmp.lt.s32.totalorder %s190_s6, 3 }
   0x4   : > { %p87_p2 = pnand %p171_p0, %p86_p1 }
   0x5   : > { %p104_p3 = scmp.lt.s32.totalorder (!%p87_p2), %s167_s7, 1 }
   0x6   : > { %90 = sbr.rel (%p87_p2) target bundleno = 16 (0x10), region = 24 }
   0xb   : > { %s211_s7 = smov (!%p104_p3, %s167_s7), 1 }
   0xc   : > { %s172_s8 = sshll.u32 %s211_s7, 3 }
   0xd   : > { %s107_s11 = scalar_lea.vmem %s208_s0, %s172_s8  ;;  %s111_s14 = scalar_lea.vmem %s209_s1, %s172_s8 }
   0xe   : > { %v112_v0 = vld [vmem:[%s107_s11] sm:$0xff] }
   0xf   : > { %113 = vst [vmem:[%s111_s14] sm:$0xff] %v112_v0 }
  0x10 PF: > { %s11_s6 = sadd.s32 1, %s190_s6  }
  0x11   : > { %p8_p4 = scmp.ge.s32.totalorder %s11_s6, 4  }
  0x13   :  { %10 = sbr.rel (!%p8_p4) target bundleno = 1 (0x1), region = 54 }

</bundles_post_ra>
